<compile_context>
chip_gen: v7x
topology: tpu7x:2x2x1
jax: 0.10.0
libtpu: 0.0.40
codegen_flags: <defaults>
</compile_context>

<pallas_src>
import math
import functools

import jax
import jax.numpy as jnp
from jax import lax
from jax.experimental import pallas as pl
from jax.experimental.pallas import tpu as pltpu


# ---------------------------------------------------------------------------
# Kernels
# ---------------------------------------------------------------------------

def _per_pixel_loss(preds_ref, labels_ref, thresh_unused, ignore_label, num_classes):
    """Shared body: numerically-stable CE (reduction='none') for one (C, TP) tile."""
    x = preds_ref[0].astype(jnp.float32)                 # (C, TP) logits on sublanes
    lbl = labels_ref[0]                                  # (1, TP) int32
    valid = lbl != ignore_label                          # (1, TP) bool

    m = jnp.max(x, axis=0, keepdims=True)                                   # (1, TP)
    lse = m + jnp.log(jnp.sum(jnp.exp(x - m), axis=0, keepdims=True))       # (1, TP)
    cls_iota = lax.broadcasted_iota(jnp.int32, x.shape, 0)                  # (C, TP)
    # Skip the "safe label" select when ignore_label can never collide with a class id.
    if 0 <= ignore_label < num_classes:
        tgt = jnp.where(valid, lbl, 0)
    else:
        tgt = lbl
    picked = jnp.sum(jnp.where(cls_iota == tgt, x, 0.0), axis=0, keepdims=True)  # (1, TP)
    loss = jnp.where(valid, lse - picked, 0.0)                                   # (1, TP)
    return loss, valid


def _make_stats_kernel(thresh: float, ignore_label: int, num_classes: int):
    def kernel(preds_ref, labels_ref, stats_ref):
        loss, valid = _per_pixel_loss(preds_ref, labels_ref, thresh,
                                      ignore_label, num_classes)
        hard = loss > thresh                              # padded / ignored -> loss 0, never hard

        # Per-tile scalars (tile <= 16384 -> counts exact in f32).
        s_hard = jnp.sum(jnp.where(hard, loss, 0.0), keepdims=True)   # (1, 1)
        c_hard = jnp.sum(hard.astype(jnp.float32), keepdims=True)     # (1, 1)
        c_valid = jnp.sum(valid.astype(jnp.float32), keepdims=True)   # (1, 1)

        # Pack into one lane-dense 128-wide store: lanes 0..2 carry the stats.
        lane = lax.broadcasted_iota(jnp.int32, (1, 128), 1)
        stats_ref[0] = (jnp.where(lane == 0, s_hard, 0.0)
                        + jnp.where(lane == 1, c_hard, 0.0)
                        + jnp.where(lane == 2, c_valid, 0.0))
    return kernel


def _make_loss_kernel(ignore_label: int, num_classes: int):
    def kernel(preds_ref, labels_ref, loss_ref):
        loss, _ = _per_pixel_loss(preds_ref, labels_ref, 0.0,
                                  ignore_label, num_classes)
        loss_ref[0] = loss                                # lane-dense store
    return kernel


# ---------------------------------------------------------------------------
# pallas_call wrappers
# ---------------------------------------------------------------------------

def _vmem_budget():
    """Generation-aware (working-set budget, vmem_limit_bytes)."""
    try:
        phys = pltpu.get_tpu_info().vmem_capacity_bytes
    except Exception:
        phys = 64 << 20                       # conservative default (v7x per-TC)
    if phys <= (64 << 20):                    # v7x: 64 MiB physical per TensorCore
        return 18 << 20, 30 << 20
    return 40 << 20, 64 << 20                 # v5e / v6e: 128 MiB physical


def _pick_pixel_tile(HW, C, itemsize, budget_bytes):
    # Per-pixel VMEM bytes: double-buffered preds + labels blocks plus ~5 live f32
    # (C, tile) temporaries inside the kernel (cast, exp arg, iota, select, ...).
    per_px = C * (2 * itemsize + 20) + 24
    cap = (budget_bytes // per_px) // 128 * 128
    cap = max(128, min(16384, cap))
    hw_cap = -(-HW // 128) * 128              # don't over-pad tiny inputs
    return int(min(cap, hw_cap))


def _ohem_stats(preds3, labels3, thresh, ignore_label, tp, vmem_limit):
    # preds3: (N, C, HWp), labels3: (N, 1, HWp), HWp % tp == 0, tp % 128 == 0
    N, C, HWp = preds3.shape
    n_tiles = HWp // tp
    return pl.pallas_call(
        _make_stats_kernel(thresh, ignore_label, C),
        out_shape=jax.ShapeDtypeStruct((N * n_tiles, 1, 128), jnp.float32),
        grid_spec=pltpu.PrefetchScalarGridSpec(
            num_scalar_prefetch=0,
            grid=(N, n_tiles),
            in_specs=[
                pl.BlockSpec((1, C, tp), lambda n, s: (n, 0, s)),
                pl.BlockSpec((1, 1, tp), lambda n, s: (n, 0, s)),
            ],
            out_specs=pl.BlockSpec((1, 1, 128), lambda n, s: (n * n_tiles + s, 0, 0)),
        ),
        # No carried state -> both axes parallel (dual-TC on v7x even when N == 1).
        compiler_params=pltpu.CompilerParams(
            dimension_semantics=("parallel", "parallel"),
            vmem_limit_bytes=vmem_limit),
    )(preds3, labels3)


def _ohem_losses(preds3, labels3, ignore_label, tp, vmem_limit):
    N, C, HWp = preds3.shape
    return pl.pallas_call(
        _make_loss_kernel(ignore_label, C),
        out_shape=jax.ShapeDtypeStruct((N, 1, HWp), jnp.float32),
        grid_spec=pltpu.PrefetchScalarGridSpec(
            num_scalar_prefetch=0,
            grid=(N, HWp // tp),
            in_specs=[
                pl.BlockSpec((1, C, tp), lambda n, s: (n, 0, s)),
                pl.BlockSpec((1, 1, tp), lambda n, s: (n, 0, s)),
            ],
            out_specs=pl.BlockSpec((1, 1, tp), lambda n, s: (n, 0, s)),
        ),
        compiler_params=pltpu.CompilerParams(
            dimension_semantics=("parallel", "parallel"),
            vmem_limit_bytes=vmem_limit),
    )(preds3, labels3)


# ---------------------------------------------------------------------------
# Forward pass
# ---------------------------------------------------------------------------

def _ohem_forward_single(preds, labels, ignore_label, thresh_prob):
    # preds: (N, C, H, W) logits (f32 or bf16 -- bf16 halves HBM traffic), labels: (N, H, W)
    # TODO(synk): bilinear interpolation when preds spatial != labels spatial is not implemented.
    N, C, H, W = preds.shape
    thresh = -math.log(thresh_prob)
    HW = H * W

    budget, vmem_limit = _vmem_budget()
    tp = _pick_pixel_tile(HW, C, preds.dtype.itemsize, budget)
    HWp = -(-HW // tp) * tp
    pad = HWp - HW

    # Pure reshapes in native NCHW order: no transpose, no extra HBM pass.
    preds3 = preds.reshape(N, C, HW)
    labels3 = labels.reshape(N, 1, HW).astype(jnp.int32)
    if pad:
        # Padded pixels carry ignore_label -> loss 0, not hard, not valid: result unchanged.
        preds3 = jnp.pad(preds3, ((0, 0), (0, 0), (0, pad)))
        labels3 = jnp.pad(labels3, ((0, 0), (0, 0), (0, pad)),
                          constant_values=ignore_label)

    stats = _ohem_stats(preds3, labels3, thresh, ignore_label, tp, vmem_limit)[:, 0, :]
    sum_hard = jnp.sum(stats[:, 0])
    count_hard = jnp.sum(stats[:, 1].astype(jnp.int32))    # exact integer accumulation
    count_valid = jnp.sum(stats[:, 2].astype(jnp.int32))
    n_min = count_valid // 16

    # Common path: mean of hard losses (0/0 -> NaN matches PyTorch's mean-of-empty
    # degenerate case when there are no hard pixels and n_min == 0).
    mean_hard = sum_hard / count_hard.astype(jnp.float32)

    def topk_branch():
        # Rare fallback: mean of the top n_min losses.  Only here do we materialize
        # the per-pixel loss (second Pallas kernel) and pay the O(P log P) sort.
        loss_flat = _ohem_losses(preds3, labels3, ignore_label, tp, vmem_limit).reshape(-1)
        sorted_desc = jnp.sort(loss_flat)[::-1]
        csum = jnp.cumsum(sorted_desc)
        idx = jnp.maximum(n_min - 1, 0)
        return csum[idx] / jnp.maximum(n_min, 1).astype(jnp.float32)

    def mean_branch():
        return mean_hard

    return lax.cond(count_hard < n_min, topk_branch, mean_branch)


def ohem_cross_entropy(preds, labels, ignore_label=255, thresh=0.7, aux_weights=(1, 0.4)):
    """Forward pass of OhemCrossEntropy. `preds` may be a single array or a list/tuple."""
    fwd = functools.partial(_ohem_forward_single,
                            ignore_label=ignore_label, thresh_prob=thresh)
    if isinstance(preds, (list, tuple)):
        return sum(w * fwd(p, labels) for p, w in zip(preds, aux_weights))
    return fwd(preds, labels)


# ---------------------------------------------------------------------------
# Pure-JAX reference (for a quick correctness check)
# ---------------------------------------------------------------------------

def _reference(preds, labels, ignore_label=255, thresh_prob=0.7):
    N, C, H, W = preds.shape
    thresh = -math.log(thresh_prob)
    logits = preds.transpose(0, 2, 3, 1).reshape(-1, C).astype(jnp.float32)
    lbl = labels.reshape(-1)
    valid = lbl != ignore_label
    logz = jax.scipy.special.logsumexp(logits, axis=-1)
    picked = jnp.take_along_axis(logits, jnp.where(valid, lbl, 0)[:, None], axis=-1)[:, 0]
    loss = jnp.where(valid, logz - picked, 0.0)
    n_min = jnp.sum(valid) // 16
    hard = loss > thresh
    count_hard = jnp.sum(hard)
    mean_hard = jnp.sum(jnp.where(hard, loss, 0.0)) / count_hard
    topk_mean = (jnp.cumsum(jnp.sort(loss)[::-1])[jnp.maximum(n_min - 1, 0)]
                 / jnp.maximum(n_min, 1))
    return jnp.where(count_hard < n_min, topk_mean, mean_hard)


if __name__ == "__main__":
    key = jax.random.PRNGKey(0)
    k1, k2, k3 = jax.random.split(key, 3)

    N, C, H, W = 2, 4, 16, 16
    preds = jax.random.normal(k1, (N, C, H, W), dtype=jnp.float32)
    labels = jax.random.randint(k2, (N, H, W), 0, C).astype(jnp.int32)
    # Sprinkle some ignored pixels (ignore_label = 255).
    ignore_mask = jax.random.uniform(k3, (N, H, W)) < 0.1
    labels = jnp.where(ignore_mask, 255, labels)

    out = jax.jit(ohem_cross_entropy)(preds, labels)
    jax.block_until_ready(out)

    ref = _reference(preds, labels)
    assert abs(float(out) - float(ref)) <= 1e-4 * max(1.0, abs(float(ref))), (out, ref)
    print("KERNEL_OK")
</pallas_src>

<mosaic_0001>
module attributes {stable_mosaic.version = 11 : i64} {
  func.func @kernel(%arg0: i32, %arg1: i32, %arg2: memref<1x4x256xf32, #tpu.memory_space<vmem>>, %arg3: memref<1x1x256xi32, #tpu.memory_space<vmem>>, %arg4: memref<1x1x128xf32, #tpu.memory_space<vmem>>) attributes {dimension_semantics = [#tpu.dimension_semantics<parallel>, #tpu.dimension_semantics<parallel>], iteration_bounds = array<i64: 2, 1>, scalar_prefetch = 0 : i64, scratch_operands = 0 : i64, tpu.core_type = #tpu.core_type<tc>, window_params = [{transform_indices = @transform_0, window_bounds = array<i64: 1, 4, 256>}, {transform_indices = @transform_1, window_bounds = array<i64: 1, 1, 256>}, {transform_indices = @transform_2, window_bounds = array<i64: 1, 1, 128>}]} {
    %c0 = arith.constant 0 : index
    %c0_0 = arith.constant 0 : index
    %c0_1 = arith.constant 0 : index
    %0 = vector.load %arg2[%c0, %c0_0, %c0_1] : memref<1x4x256xf32, #tpu.memory_space<vmem>>, vector<1x4x256xf32>
    %1 = vector.shape_cast %0 : vector<1x4x256xf32> to vector<4x256xf32>
    %c0_2 = arith.constant 0 : index
    %c0_3 = arith.constant 0 : index
    %c0_4 = arith.constant 0 : index
    %2 = vector.load %arg3[%c0_2, %c0_3, %c0_4] : memref<1x1x256xi32, #tpu.memory_space<vmem>>, vector<1x1x256xi32>
    %3 = vector.shape_cast %2 : vector<1x1x256xi32> to vector<1x256xi32>
    %c255_i32 = arith.constant 255 : i32
    %4 = vector.broadcast %c255_i32 : i32 to vector<1x256xi32>
    %5 = arith.cmpi ne, %3, %4 : vector<1x256xi32>
    %cst = arith.constant dense<0xFF800000> : vector<256xf32>
    %6 = vector.multi_reduction <maximumf>, %1, %cst [0] : vector<4x256xf32> to vector<256xf32>
    %7 = vector.shape_cast %6 : vector<256xf32> to vector<1x256xf32>
    %8 = vector.broadcast %7 : vector<1x256xf32> to vector<4x256xf32>
    %9 = arith.subf %1, %8 : vector<4x256xf32>
    %10 = math.exp %9 : vector<4x256xf32>
    %cst_5 = arith.constant dense<0.000000e+00> : vector<256xf32>
    %11 = vector.multi_reduction <add>, %10, %cst_5 [0] : vector<4x256xf32> to vector<256xf32>
    %12 = vector.shape_cast %11 : vector<256xf32> to vector<1x256xf32>
    %13 = math.log %12 : vector<1x256xf32>
    %14 = arith.addf %7, %13 : vector<1x256xf32>
    %15 = tpu.iota {dimensions = array<i32: 0>} : vector<4x256xi32>
    %16 = vector.broadcast %3 : vector<1x256xi32> to vector<4x256xi32>
    %17 = arith.cmpi eq, %15, %16 : vector<4x256xi32>
    %cst_6 = arith.constant 0.000000e+00 : f32
    %18 = vector.broadcast %cst_6 : f32 to vector<4x256xf32>
    %19 = arith.select %17, %1, %18 : vector<4x256xi1>, vector<4x256xf32>
    %cst_7 = arith.constant dense<0.000000e+00> : vector<256xf32>
    %20 = vector.multi_reduction <add>, %19, %cst_7 [0] : vector<4x256xf32> to vector<256xf32>
    %21 = vector.shape_cast %20 : vector<256xf32> to vector<1x256xf32>
    %22 = arith.subf %14, %21 : vector<1x256xf32>
    %cst_8 = arith.constant 0.000000e+00 : f32
    %23 = vector.broadcast %cst_8 : f32 to vector<1x256xf32>
    %24 = arith.select %5, %22, %23 : vector<1x256xi1>, vector<1x256xf32>
    %cst_9 = arith.constant 0.356674939 : f32
    %25 = vector.broadcast %cst_9 : f32 to vector<1x256xf32>
    %26 = arith.cmpf ogt, %24, %25 : vector<1x256xf32>
    %cst_10 = arith.constant 0.000000e+00 : f32
    %27 = vector.broadcast %cst_10 : f32 to vector<1x256xf32>
    %28 = arith.select %26, %24, %27 : vector<1x256xi1>, vector<1x256xf32>
    %29 = vector.shape_cast %28 : vector<1x256xf32> to vector<1x1x256xf32>
    %cst_11 = arith.constant dense<0.000000e+00> : vector<1xf32>
    %30 = vector.multi_reduction <add>, %29, %cst_11 [1, 2] : vector<1x1x256xf32> to vector<1xf32>
    %31 = vector.shape_cast %30 : vector<1xf32> to vector<1x1x1xf32>
    %32 = vector.extract %31[0, 0, 0] : f32 from vector<1x1x1xf32>
    %33 = vector.broadcast %32 : f32 to vector<1x1xf32>
    %34 = arith.extui %26 : vector<1x256xi1> to vector<1x256xi32>
    %35 = arith.sitofp %34 : vector<1x256xi32> to vector<1x256xf32>
    %36 = vector.shape_cast %35 : vector<1x256xf32> to vector<1x1x256xf32>
    %cst_12 = arith.constant dense<0.000000e+00> : vector<1xf32>
    %37 = vector.multi_reduction <add>, %36, %cst_12 [1, 2] : vector<1x1x256xf32> to vector<1xf32>
    %38 = vector.shape_cast %37 : vector<1xf32> to vector<1x1x1xf32>
    %39 = vector.extract %38[0, 0, 0] : f32 from vector<1x1x1xf32>
    %40 = vector.broadcast %39 : f32 to vector<1x1xf32>
    %41 = arith.extui %5 : vector<1x256xi1> to vector<1x256xi32>
    %42 = arith.sitofp %41 : vector<1x256xi32> to vector<1x256xf32>
    %43 = vector.shape_cast %42 : vector<1x256xf32> to vector<1x1x256xf32>
    %cst_13 = arith.constant dense<0.000000e+00> : vector<1xf32>
    %44 = vector.multi_reduction <add>, %43, %cst_13 [1, 2] : vector<1x1x256xf32> to vector<1xf32>
    %45 = vector.shape_cast %44 : vector<1xf32> to vector<1x1x1xf32>
    %46 = vector.extract %45[0, 0, 0] : f32 from vector<1x1x1xf32>
    %47 = vector.broadcast %46 : f32 to vector<1x1xf32>
    %48 = tpu.iota {dimensions = array<i32: 1>} : vector<1x128xi32>
    %c0_i32 = arith.constant 0 : i32
    %49 = vector.broadcast %c0_i32 : i32 to vector<1x128xi32>
    %50 = arith.cmpi eq, %48, %49 : vector<1x128xi32>
    %cst_14 = arith.constant 0.000000e+00 : f32
    %51 = vector.shape_cast %33 : vector<1x1xf32> to vector<1x1xf32>
    %52 = vector.broadcast %51 : vector<1x1xf32> to vector<1x128xf32>
    %53 = vector.broadcast %cst_14 : f32 to vector<1x128xf32>
    %54 = arith.select %50, %52, %53 : vector<1x128xi1>, vector<1x128xf32>
    %c1_i32 = arith.constant 1 : i32
    %55 = vector.broadcast %c1_i32 : i32 to vector<1x128xi32>
    %56 = arith.cmpi eq, %48, %55 : vector<1x128xi32>
    %cst_15 = arith.constant 0.000000e+00 : f32
    %57 = vector.shape_cast %40 : vector<1x1xf32> to vector<1x1xf32>
    %58 = vector.broadcast %57 : vector<1x1xf32> to vector<1x128xf32>
    %59 = vector.broadcast %cst_15 : f32 to vector<1x128xf32>
    %60 = arith.select %56, %58, %59 : vector<1x128xi1>, vector<1x128xf32>
    %61 = arith.addf %54, %60 : vector<1x128xf32>
    %c2_i32 = arith.constant 2 : i32
    %62 = vector.broadcast %c2_i32 : i32 to vector<1x128xi32>
    %63 = arith.cmpi eq, %48, %62 : vector<1x128xi32>
    %cst_16 = arith.constant 0.000000e+00 : f32
    %64 = vector.shape_cast %47 : vector<1x1xf32> to vector<1x1xf32>
    %65 = vector.broadcast %64 : vector<1x1xf32> to vector<1x128xf32>
    %66 = vector.broadcast %cst_16 : f32 to vector<1x128xf32>
    %67 = arith.select %63, %65, %66 : vector<1x128xi1>, vector<1x128xf32>
    %68 = arith.addf %61, %67 : vector<1x128xf32>
    %c0_17 = arith.constant 0 : index
    %c0_18 = arith.constant 0 : index
    %c0_19 = arith.constant 0 : index
    %69 = vector.load %arg4[%c0_17, %c0_18, %c0_19] : memref<1x1x128xf32, #tpu.memory_space<vmem>>, vector<1x1x128xf32>
    %70 = vector.shape_cast %69 : vector<1x1x128xf32> to vector<1x128xf32>
    %71 = vector.shape_cast %68 : vector<1x128xf32> to vector<1x1x128xf32>
    tpu.vector_store %arg4[%c0_17, %c0_18, %c0_19], %71 {strides = array<i32>} : memref<1x1x128xf32, #tpu.memory_space<vmem>>, vector<1x1x128xf32>,
    return
  }
  func.func @transform_0(%arg0: i32, %arg1: i32) -> (i32, i32, i32) {
    %c0_i32 = arith.constant 0 : i32
    %c0_i32_0 = arith.constant 0 : i32
    return %arg0, %c0_i32, %arg1 : i32, i32, i32
  }
  func.func @transform_1(%arg0: i32, %arg1: i32) -> (i32, i32, i32) {
    %c0_i32 = arith.constant 0 : i32
    %c0_i32_0 = arith.constant 0 : i32
    return %arg0, %c0_i32, %arg1 : i32, i32, i32
  }
  func.func @transform_2(%arg0: i32, %arg1: i32) -> (i32, i32, i32) {
    %c1_i32 = arith.constant 1 : i32
    %0 = arith.muli %arg0, %c1_i32 : i32
    %1 = arith.addi %0, %arg1 : i32
    %c0_i32 = arith.constant 0 : i32
    %c0_i32_0 = arith.constant 0 : i32
    %c0_i32_1 = arith.constant 0 : i32
    return %1, %c0_i32, %c0_i32_0 : i32, i32, i32
  }
}

module attributes {stable_mosaic.version = 11 : i64} {
  func.func @kernel(%arg0: i32, %arg1: i32, %arg2: memref<1x4x256xf32, #tpu.memory_space<vmem>>, %arg3: memref<1x1x256xi32, #tpu.memory_space<vmem>>, %arg4: memref<1x1x256xf32, #tpu.memory_space<vmem>>) attributes {dimension_semantics = [#tpu.dimension_semantics<parallel>, #tpu.dimension_semantics<parallel>], iteration_bounds = array<i64: 2, 1>, scalar_prefetch = 0 : i64, scratch_operands = 0 : i64, tpu.core_type = #tpu.core_type<tc>, window_params = [{transform_indices = @transform_0, window_bounds = array<i64: 1, 4, 256>}, {transform_indices = @transform_1, window_bounds = array<i64: 1, 1, 256>}, {transform_indices = @transform_2, window_bounds = array<i64: 1, 1, 256>}]} {
    %c0 = arith.constant 0 : index
    %c0_0 = arith.constant 0 : index
    %c0_1 = arith.constant 0 : index
    %0 = vector.load %arg2[%c0, %c0_0, %c0_1] : memref<1x4x256xf32, #tpu.memory_space<vmem>>, vector<1x4x256xf32>
    %1 = vector.shape_cast %0 : vector<1x4x256xf32> to vector<4x256xf32>
    %c0_2 = arith.constant 0 : index
    %c0_3 = arith.constant 0 : index
    %c0_4 = arith.constant 0 : index
    %2 = vector.load %arg3[%c0_2, %c0_3, %c0_4] : memref<1x1x256xi32, #tpu.memory_space<vmem>>, vector<1x1x256xi32>
    %3 = vector.shape_cast %2 : vector<1x1x256xi32> to vector<1x256xi32>
    %c255_i32 = arith.constant 255 : i32
    %4 = vector.broadcast %c255_i32 : i32 to vector<1x256xi32>
    %5 = arith.cmpi ne, %3, %4 : vector<1x256xi32>
    %cst = arith.constant dense<0xFF800000> : vector<256xf32>
    %6 = vector.multi_reduction <maximumf>, %1, %cst [0] : vector<4x256xf32> to vector<256xf32>
    %7 = vector.shape_cast %6 : vector<256xf32> to vector<1x256xf32>
    %8 = vector.broadcast %7 : vector<1x256xf32> to vector<4x256xf32>
    %9 = arith.subf %1, %8 : vector<4x256xf32>
    %10 = math.exp %9 : vector<4x256xf32>
    %cst_5 = arith.constant dense<0.000000e+00> : vector<256xf32>
    %11 = vector.multi_reduction <add>, %10, %cst_5 [0] : vector<4x256xf32> to vector<256xf32>
    %12 = vector.shape_cast %11 : vector<256xf32> to vector<1x256xf32>
    %13 = math.log %12 : vector<1x256xf32>
    %14 = arith.addf %7, %13 : vector<1x256xf32>
    %15 = tpu.iota {dimensions = array<i32: 0>} : vector<4x256xi32>
    %16 = vector.broadcast %3 : vector<1x256xi32> to vector<4x256xi32>
    %17 = arith.cmpi eq, %15, %16 : vector<4x256xi32>
    %cst_6 = arith.constant 0.000000e+00 : f32
    %18 = vector.broadcast %cst_6 : f32 to vector<4x256xf32>
    %19 = arith.select %17, %1, %18 : vector<4x256xi1>, vector<4x256xf32>
    %cst_7 = arith.constant dense<0.000000e+00> : vector<256xf32>
    %20 = vector.multi_reduction <add>, %19, %cst_7 [0] : vector<4x256xf32> to vector<256xf32>
    %21 = vector.shape_cast %20 : vector<256xf32> to vector<1x256xf32>
    %22 = arith.subf %14, %21 : vector<1x256xf32>
    %cst_8 = arith.constant 0.000000e+00 : f32
    %23 = vector.broadcast %cst_8 : f32 to vector<1x256xf32>
    %24 = arith.select %5, %22, %23 : vector<1x256xi1>, vector<1x256xf32>
    %c0_9 = arith.constant 0 : index
    %c0_10 = arith.constant 0 : index
    %c0_11 = arith.constant 0 : index
    %25 = vector.load %arg4[%c0_9, %c0_10, %c0_11] : memref<1x1x256xf32, #tpu.memory_space<vmem>>, vector<1x1x256xf32>
    %26 = vector.shape_cast %25 : vector<1x1x256xf32> to vector<1x256xf32>
    %27 = vector.shape_cast %24 : vector<1x256xf32> to vector<1x1x256xf32>
    tpu.vector_store %arg4[%c0_9, %c0_10, %c0_11], %27 {strides = array<i32>} : memref<1x1x256xf32, #tpu.memory_space<vmem>>, vector<1x1x256xf32>,
    return
  }
  func.func @transform_0(%arg0: i32, %arg1: i32) -> (i32, i32, i32) {
    %c0_i32 = arith.constant 0 : i32
    %c0_i32_0 = arith.constant 0 : i32
    return %arg0, %c0_i32, %arg1 : i32, i32, i32
  }
  func.func @transform_1(%arg0: i32, %arg1: i32) -> (i32, i32, i32) {
    %c0_i32 = arith.constant 0 : i32
    %c0_i32_0 = arith.constant 0 : i32
    return %arg0, %c0_i32, %arg1 : i32, i32, i32
  }
  func.func @transform_2(%arg0: i32, %arg1: i32) -> (i32, i32, i32) {
    %c0_i32 = arith.constant 0 : i32
    %c0_i32_0 = arith.constant 0 : i32
    return %arg0, %c0_i32, %arg1 : i32, i32, i32
  }
}

</mosaic_0001>

<bundles_post_ra>
// kernel: ohem_cross_entropy.1
= control target key start
LH: loop header
LB: loop body
LE: loop exit
PB: predicated region body
PF: predicated region fallthrough
CT: control target
= control target key end

     0   :  { %s569_s9 = smov 0   ;;  %s571_s10 = smov 0   ;;  %s654_s0 = inlined_call_operand.vmem [shape: f32[2,4,256], index: 0, kind: input, shape index: {}]   ;;  %s655_s1 = inlined_call_operand.vmem [shape: s32[2,1,256], index: 1, kind: input, shape index: {}]   ;;  %s656_s2 = inlined_call_operand.vmem [shape: f32[2,1,128], index: 2, kind: output, shape index: {}]  }
   0x1   :  { %s573_s11 = smov 0  }
   0x2 LB: > { %s24_s12 = sadd.s32 1, %s546_s10  ;;  %p480_p0 = scmp.ge.s32.totalorder %s550_s11, 1  ;;  %s550_s11 = sphi %s573_s11, %s12_s11   ;;  %s546_s10 = sphi %s571_s10, %s658_s10   ;;  %s542_s9 = sphi %s569_s9, %s657_s9  }
   0x3   : > { %p26_p1 = scmp.ge.s32.totalorder %s24_s12, 2  ;;  %p149_p2 = scmp.lt.s32.totalorder %s550_s11, 3 }
   0x5   : > { %s660_s12 = smov (%p26_p1, %s24_s12), 0  ;;  %p150_p3 = pnand %p480_p0, %p149_p2 }
   0x6   : > { %p183_p4 = scmp.lt.s32.totalorder (!%p150_p3), %s542_s9, 1  ;;  %v257_v0 = vlaneseq (!%p150_p3)  ;;  %vm212_vm0 = vcmask (!%p150_p3), 1043456   ;;  %vm319_vm2 = vcmask (!%p150_p3), 1040384   ;;  %v552_v7 = vmov (!%p150_p3), 0.0  }
   0x7   : > { %153 = sbr.rel (%p150_p3) target bundleno = 312 (0x138), region = 28  ;;  %v553_v63 = vmov (!%p150_p3), 1966171168  }
   0x8   : > { %v590_v1 = vshrl.u32 (!%p150_p3), %v257_v0, 7 }
   0xa   : > { %v604_v4 = vsub.s32 (!%p150_p3), 0, %v590_v1  ;;  %v607_v5 = vsub.s32 (!%p150_p3), 1, %v590_v1 }
   0xe   : > { %s662_s9 = smov (!%p183_p4, %s542_s9), 1 }
   0xf   : > { %s483_s13 = sshll.u32 %s662_s9, 1  ;;  %s488_s14 = sshll.u32 %s662_s9, 3 }
  0x10   : > { %s199_s17 = scalar_lea.vmem %s655_s1, %s483_s13  ;;  %s190_s20 = scalar_lea.vmem %s654_s0, %s488_s14 }
  0x11   : > { %v600_v2 = vld [vmem:[%s199_s17] sm:$0x3]  ;;  %s204_s26 = scalar_lea.vmem %s656_s2, %s662_s9 }
  0x12   : > { %v206_v3 = vld [vmem:[%s190_s20] sm:$0xff]  ;;  %vm208_vm1 = vcmp.ne.s32.totalorder %v600_v2, 255  ;;  %v262_v31 = vrot.slane %v600_v2, %v604_v4  ;;  %v266_v32 = vrot.slane %v600_v2, %v607_v5 }
  0x13   : > { %v210_v6 = vcombine.high %v206_v3, %v206_v3  ;;  %v485_v8 = vsel %vm208_vm1, 1.0, %v552_v7  ;;  %v213_v9 = vsel %vm212_vm0, %v206_v3, -inf }
  0x14   : > { %v363_v10 = vrot.slane %v485_v8, %v604_v4  ;;  %v367_v11 = vrot.slane %v485_v8, %v607_v5  ;;  %v214_v12 = vrot.slane %v213_v9, 4  ;;  %vm267_vm3 = vcmp.eq.s32.totalorder %v590_v1, %v262_v31 }
  0x15   : > { %v220_v13 = vsel %vm212_vm0, %v210_v6, -inf  ;;  %vm268_vm4 = vcmp.eq.s32.totalorder %v590_v1, %v266_v32  ;;  %v269_v33 = vsel %vm267_vm3, %v206_v3, 0.0 }
  0x16   : > { %v370_v14 = vsel %vm319_vm2, %v363_v10, 0.0  ;;  %v371_v15 = vsel %vm319_vm2, %v367_v11, 0.0  ;;  %v221_v16 = vrot.slane %v220_v13, 4  ;;  %v215_v18 = vmax.f32 %v213_v9, %v214_v12 }
  0x17   : > { %v372_v17 = vadd.f32 %v371_v15, %v370_v14  ;;  %v270_v35 = vsel %vm268_vm4, %v210_v6, 0.0  ;;  %v271_v38 = vsel %vm212_vm0, %v269_v33, 0.0 }
  0x18   : > { %v222_v19 = vmax.f32 %v220_v13, %v221_v16  ;;  %v216_v20 = vrot.slane %v215_v18, 2  ;;  %v278_v41 = vsel %vm212_vm0, %v270_v35, 0.0  ;;  %v272_v44 = vrot.slane %v271_v38, 4 }
  0x19   : > { %373 = vadd.xlane.f32.xlu1 %v372_v17  ;;  %v279_v47 = vrot.slane %v278_v41, 4 }
  0x1a   : > { %v223_v21 = vrot.slane %v222_v19, 2  ;;  %v217_v22 = vmax.f32 %v215_v18, %v216_v20  ;;  %v273_v50 = vadd.f32 %v272_v44, %v271_v38 }
  0x1b   : > { %v280_v53 = vadd.f32 %v279_v47, %v278_v41 }
  0x1c   : > { %v224_v23 = vmax.f32 %v222_v19, %v223_v21  ;;  %v218_v24 = vrot.slane %v217_v22, 1  ;;  %v274_v56 = vrot.slane %v273_v50, 2 }
  0x1d   : > { %v281_v58 = vrot.slane %v280_v53, 2 }
  0x1e   : > { %v225_v25 = vrot.slane %v224_v23, 1  ;;  %v219_v26 = vmax.f32 %v217_v22, %v218_v24  ;;  %v275_v59 = vadd.f32 %v274_v56, %v273_v50 }
  0x1f   : > { %v282_v60 = vadd.f32 %v281_v58, %v280_v53 }
  0x20   : > { %v226_v27 = vmax.f32 %v224_v23, %v225_v25  ;;  %v276_v61 = vrot.slane %v275_v59, 1 }
  0x21   : > { %v283_v62 = vrot.slane %v282_v60, 1 }
  0x22   : > { %v229_v28 = vcombine.low %v219_v26, %v226_v27  ;;  %v277_v9 = vadd.f32 %v276_v61, %v275_v59 }
  0x23   : > { %v284_v13 = vadd.f32 %v283_v62, %v282_v60 }
  0x24   : > { %v231_v29 = vsub.f32 %v206_v3, %v229_v28  ;;  %v291_v3 = vunpack.c.l.s4 %v553_v63 }
  0x26   : > { %v232_v30 = vmul.f32 1.442695, %v231_v29  ;;  %v292_v14 = vunpack.c.0.s8 %v291_v3 }
  0x28   : > { %522 = vpow2.f32 %v232_v30  ;;  %v295_v18 = vsub.s32 %v292_v14, %v590_v1 }
  0x32   : > { %v523_v34 = vpop.eup %522 }
  0x33   : > { %v235_v36 = vcombine.high %v523_v34, %v523_v34  ;;  %v237_v37 = vsel %vm212_vm0, %v523_v34, 0.0 }
  0x34   : > { %v238_v39 = vrot.slane %v237_v37, 4 }
  0x35   : > { %v244_v40 = vsel %vm212_vm0, %v235_v36, 0.0 }
  0x36   : > { %v239_v42 = vadd.f32 %v238_v39, %v237_v37  ;;  %v245_v43 = vrot.slane %v244_v40, 4 }
  0x38   : > { %v240_v45 = vrot.slane %v239_v42, 2  ;;  %v246_v46 = vadd.f32 %v245_v43, %v244_v40 }
  0x3a   : > { %v241_v48 = vadd.f32 %v240_v45, %v239_v42  ;;  %v247_v49 = vrot.slane %v246_v46, 2 }
  0x3c   : > { %v242_v51 = vrot.slane %v241_v48, 1  ;;  %v248_v52 = vadd.f32 %v247_v49, %v246_v46 }
  0x3e   : > { %v243_v54 = vadd.f32 %v242_v51, %v241_v48  ;;  %v249_v55 = vrot.slane %v248_v52, 1  ;;  %v383_v51 = vand.u32 127, %v257_v0 }
  0x40   : > { %v250_v57 = vadd.f32 %v249_v55, %v248_v52  ;;  %524 = vlog2.f32 %v243_v54  ;;  %vm384_vm6 = vcmp.eq.s32.totalorder %v383_v51, 0  ;;  %vm387_vm7 = vcmp.eq.s32.totalorder %v383_v51, 1 }
  0x41   : > { %vm391_vm8 = vcmp.eq.s32.totalorder %v383_v51, 2 }
  0x42   : > { %526 = vlog2.f32 %v250_v57 }
  0x4a   : > { %v525_v6 = vpop.eup %524 }
  0x4b   : > { %v252_v8 = vmul.f32 0.6931472, %v525_v6 }
  0x4c   : > { %v527_v10 = vpop.eup %526 }
  0x4d   : > { %v254_v11 = vmul.f32 0.6931472, %v527_v10  ;;  %v255_v12 = vadd.f32 %v252_v8, %v219_v26 }
  0x4f   : > { %v256_v15 = vadd.f32 %v254_v11, %v226_v27  ;;  %v285_v16 = vsub.f32 %v255_v12, %v277_v9 }
  0x51   : > { %v286_v17 = vsub.f32 %v256_v15, %v284_v13 }
  0x53   : > { %v289_v19 = vcombine.low %v285_v16, %v286_v17 }
  0x55   : > { %v296_v20 = vrot.slane %v289_v19, %v295_v18 }
  0x57   : > { %v303_v21 = vrot.slane %v296_v20, %v295_v18 }
  0x59   : > { %v305_v22 = vsel %vm208_vm1, %v303_v21, 0.0 }
  0x5a   : > { %vm306_vm5 = vcmp.gt.f32.partialorder %v305_v22, 0.35667494 }
  0x5b   : > { %v307_v23 = vsel %vm306_vm5, %v305_v22, 0.0  ;;  %v484_v24 = vsel %vm306_vm5, 1.0, %v552_v7 }
  0x5c   : > { %v312_v25 = vrot.slane %v307_v23, %v604_v4  ;;  %v316_v26 = vrot.slane %v307_v23, %v607_v5  ;;  %v338_v27 = vrot.slane %v484_v24, %v604_v4  ;;  %v342_v28 = vrot.slane %v484_v24, %v607_v5 }
  0x5e   : > { %v320_v1 = vsel %vm319_vm2, %v312_v25, 0.0  ;;  %v321_v29 = vsel %vm319_vm2, %v316_v26, 0.0  ;;  %v345_v30 = vsel %vm319_vm2, %v338_v27, 0.0  ;;  %v346_v2 = vsel %vm319_vm2, %v342_v28, 0.0 }
  0x5f   : > { %v322_v31 = vadd.f32 %v321_v29, %v320_v1  ;;  %v347_v32 = vadd.f32 %v346_v2, %v345_v30 }
  0x61   : > { %323 = vadd.xlane.f32.xlu0 %v322_v31 }
  0x65   : > { %348 = vadd.xlane.f32.xlu0 %v347_v32 }
  0xa6   : > { %v374_v7 = vpop.xlane.xlu1 %373 }
  0xa7   : > { %v375_v33 = vrot.slane %v374_v7, 4 }
  0xa9   : > { %v376_v34 = vadd.f32 %v375_v33, %v374_v7 }
  0xab   : > { %v377_v37 = vrot.slane %v376_v34, 2 }
  0xad   : > { %v378_v42 = vadd.f32 %v377_v37, %v376_v34 }
  0xaf   : > { %v379_v47 = vrot.slane %v378_v42, 1 }
  0xb1   : > { %v380_v50 = vadd.f32 %v379_v47, %v378_v42 }
  0xee   : > { %v324_v35 = vpop.xlane.xlu0 %323 }
  0xef   : > { %v325_v36 = vrot.slane %v324_v35, 4 }
  0xf1   : > { %v326_v4 = vadd.f32 %v325_v36, %v324_v35 }
  0xf2   : > { %v349_v5 = vpop.xlane.xlu0 %348 }
  0xf3   : > { %v327_v38 = vrot.slane %v326_v4, 2  ;;  %v350_v39 = vrot.slane %v349_v5, 4 }
  0xf5   : > { %v351_v40 = vadd.f32 %v350_v39, %v349_v5  ;;  %v328_v41 = vadd.f32 %v327_v38, %v326_v4 }
  0xf7   : > { %v352_v43 = vrot.slane %v351_v40, 2  ;;  %v329_v44 = vrot.slane %v328_v41, 1 }
  0xf9   : > { %v353_v45 = vadd.f32 %v352_v43, %v351_v40  ;;  %v330_v46 = vadd.f32 %v329_v44, %v328_v41 }
  0xfb   : > { %489 = vpush %v330_v46  ;;  %v354_v48 = vrot.slane %v353_v45, 1 }
  0xfd   : > { %v355_v49 = vadd.f32 %v354_v48, %v353_v45 }
  0xff   : > { %491 = vpush %v355_v49 }
 0x100   : > { %493 = vpush %v380_v50 }
 0x12c   : > { %s490_s21 = spop %489 }
 0x12d   : > { %v385_v52 = vstv %s490_s21 }
 0x12e   : > { %v386_v54 = vsel %vm384_vm6, %v385_v52, 0.0 }
 0x130   : > { %s492_s22 = spop %491 }
 0x131   : > { %v388_v53 = vstv %s492_s22  ;;  %s494_s23 = spop %493 }
 0x132   : > { %v389_v55 = vsel %vm387_vm7, %v388_v53, 0.0  ;;  %v392_v56 = vstv %s494_s23 }
 0x133   : > { %v390_v57 = vadd.f32 %v389_v55, %v386_v54  ;;  %v393_v58 = vsel %vm391_vm8, %v392_v56, 0.0 }
 0x135   : > { %v394_v59 = vadd.f32 %v393_v58, %v390_v57 }
 0x137   : > { %395 = vst [vmem:[%s204_s26] sm:$0x1] %v394_v59 }
 0x138 PF: > { %s12_s11 = sadd.s32 1, %s550_s11   ;;  %s657_s9 = smov %s546_s10 }
 0x139   : > { %p9_p5 = scmp.ge.s32.totalorder %s12_s11, 4   ;;  %s658_s10 = smov %s660_s12 }
 0x13b   :  { %11 = sbr.rel (!%p9_p5) target bundleno = 2 (0x2), region = 61 }

// kernel: branch_1_fun.1
= control target key start
LH: loop header
LB: loop body
LE: loop exit
PB: predicated region body
PF: predicated region fallthrough
CT: control target
= control target key end

     0   :  { %s499_s9 = smov 0   ;;  %s501_s10 = smov 0   ;;  %s551_s0 = inlined_call_operand.vmem [shape: f32[2,4,256], index: 0, kind: input, shape index: {}]   ;;  %s552_s1 = inlined_call_operand.vmem [shape: s32[2,1,256], index: 1, kind: input, shape index: {}]   ;;  %s553_s2 = inlined_call_operand.vmem [shape: f32[2,1,256], index: 2, kind: output, shape index: {}]  }
   0x1   :  { %s503_s11 = smov 0  }
   0x2 LB: > { %s24_s12 = sadd.s32 1, %s477_s10  ;;  %p419_p0 = scmp.ge.s32.totalorder %s481_s11, 1  ;;  %s481_s11 = sphi %s503_s11, %s12_s11   ;;  %s477_s10 = sphi %s501_s10, %s555_s10   ;;  %s473_s9 = sphi %s499_s9, %s554_s9  }
   0x3   : > { %p26_p1 = scmp.ge.s32.totalorder %s24_s12, 2  ;;  %p149_p2 = scmp.lt.s32.totalorder %s481_s11, 3 }
   0x5   : > { %s557_s12 = smov (%p26_p1, %s24_s12), 0  ;;  %p150_p3 = pnand %p419_p0, %p149_p2 }
   0x6   : > { %p187_p4 = scmp.lt.s32.totalorder (!%p150_p3), %s473_s9, 1  ;;  %vm220_vm0 = vcmask (!%p150_p3), 1043456   ;;  %v265_v15 = vlaneseq (!%p150_p3)  ;;  %v483_v56 = vmov (!%p150_p3), 1966171168  }
   0x7   : > { %153 = sbr.rel (%p150_p3) target bundleno = 90 (0x5a), region = 28  ;;  %v299_v57 = vunpack.c.l.s4 (!%p150_p3), %v483_v56 }
   0x8   : > { %v266_v18 = vshrl.u32 (!%p150_p3), %v265_v15, 7  ;;  %vm316_vm4 = vcmp.lt.s32.totalorder (!%p150_p3), %v265_v15, 256 }
   0xa   : > { %v269_v21 = vsub.s32 (!%p150_p3), 0, %v266_v18  ;;  %v273_v23 = vsub.s32 (!%p150_p3), 1, %v266_v18 }
   0xe   : > { %s559_s9 = smov (!%p187_p4, %s473_s9), 1 }
   0xf   : > { %s426_s13 = sshll.u32 %s559_s9, 3  ;;  %s422_s17 = sshll.u32 %s559_s9, 1 }
  0x10   : > { %s194_s16 = scalar_lea.vmem %s551_s0, %s426_s13  ;;  %s203_s20 = scalar_lea.vmem %s552_s1, %s422_s17 }
  0x11   : > { %v214_v0 = vld [vmem:[%s194_s16] sm:$0xff]  ;;  %s212_s23 = scalar_lea.vmem %s553_s2, %s422_s17 }
  0x12   : > { %v218_v1 = vcombine.high %v214_v0, %v214_v0  ;;  %v221_v2 = vsel %vm220_vm0, %v214_v0, -inf  ;;  %v215_v22 = vld [vmem:[%s203_s20] sm:$0x3] }
  0x13   : > { %v222_v3 = vrot.slane %v221_v2, 4  ;;  %v270_v24 = vrot.slane %v215_v22, %v269_v21  ;;  %v274_v25 = vrot.slane %v215_v22, %v273_v23  ;;  %vm216_vm3 = vcmp.ne.s32.totalorder %v215_v22, 255 }
  0x14   : > { %v228_v4 = vsel %vm220_vm0, %v218_v1, -inf }
  0x15   : > { %v223_v5 = vmax.f32 %v221_v2, %v222_v3  ;;  %v229_v6 = vrot.slane %v228_v4, 4  ;;  %vm275_vm1 = vcmp.eq.s32.totalorder %v266_v18, %v270_v24  ;;  %vm276_vm2 = vcmp.eq.s32.totalorder %v266_v18, %v274_v25 }
  0x16   : > { %v277_v26 = vsel %vm275_vm1, %v214_v0, 0.0  ;;  %v278_v30 = vsel %vm276_vm2, %v218_v1, 0.0  ;;  %v300_v1 = vunpack.c.0.s8 %v299_v57 }
  0x17   : > { %v224_v7 = vrot.slane %v223_v5, 2  ;;  %v230_v8 = vmax.f32 %v228_v4, %v229_v6  ;;  %v279_v32 = vsel %vm220_vm0, %v277_v26, 0.0  ;;  %v286_v36 = vsel %vm220_vm0, %v278_v30, 0.0 }
  0x18   : > { %v280_v37 = vrot.slane %v279_v32, 4  ;;  %v287_v40 = vrot.slane %v286_v36, 4 }
  0x19   : > { %v225_v9 = vmax.f32 %v223_v5, %v224_v7  ;;  %v231_v10 = vrot.slane %v230_v8, 2  ;;  %v303_v5 = vsub.s32 %v300_v1, %v266_v18 }
  0x1a   : > { %v281_v43 = vadd.f32 %v280_v37, %v279_v32  ;;  %v288_v46 = vadd.f32 %v287_v40, %v286_v36 }
  0x1b   : > { %v226_v11 = vrot.slane %v225_v9, 1  ;;  %v232_v12 = vmax.f32 %v230_v8, %v231_v10 }
  0x1c   : > { %v282_v49 = vrot.slane %v281_v43, 2  ;;  %v289_v51 = vrot.slane %v288_v46, 2 }
  0x1d   : > { %v227_v13 = vmax.f32 %v225_v9, %v226_v11  ;;  %v233_v14 = vrot.slane %v232_v12, 1 }
  0x1e   : > { %v283_v52 = vadd.f32 %v282_v49, %v281_v43  ;;  %v290_v53 = vadd.f32 %v289_v51, %v288_v46 }
  0x1f   : > { %v234_v16 = vmax.f32 %v232_v12, %v233_v14 }
  0x20   : > { %v284_v54 = vrot.slane %v283_v52, 1  ;;  %v291_v55 = vrot.slane %v290_v53, 1 }
  0x21   : > { %v237_v17 = vcombine.low %v227_v13, %v234_v16 }
  0x22   : > { %v285_v60 = vadd.f32 %v284_v54, %v283_v52 }
  0x23   : > { %v239_v19 = vsub.f32 %v214_v0, %v237_v17  ;;  %v292_v0 = vadd.f32 %v291_v55, %v290_v53 }
  0x25   : > { %v240_v20 = vmul.f32 1.442695, %v239_v19 }
  0x27   : > { %453 = vpow2.f32 %v240_v20 }
  0x31   : > { %v454_v27 = vpop.eup %453 }
  0x32   : > { %v243_v28 = vcombine.high %v454_v27, %v454_v27  ;;  %v245_v29 = vsel %vm220_vm0, %v454_v27, 0.0 }
  0x33   : > { %v246_v31 = vrot.slane %v245_v29, 4 }
  0x34   : > { %v252_v33 = vsel %vm220_vm0, %v243_v28, 0.0 }
  0x35   : > { %v247_v34 = vadd.f32 %v246_v31, %v245_v29  ;;  %v253_v35 = vrot.slane %v252_v33, 4 }
  0x37   : > { %v248_v38 = vrot.slane %v247_v34, 2  ;;  %v254_v39 = vadd.f32 %v253_v35, %v252_v33 }
  0x39   : > { %v249_v41 = vadd.f32 %v248_v38, %v247_v34  ;;  %v255_v42 = vrot.slane %v254_v39, 2 }
  0x3b   : > { %v250_v44 = vrot.slane %v249_v41, 1  ;;  %v256_v45 = vadd.f32 %v255_v42, %v254_v39 }
  0x3d   : > { %v251_v47 = vadd.f32 %v250_v44, %v249_v41  ;;  %v257_v48 = vrot.slane %v256_v45, 1 }
  0x3f   : > { %v258_v50 = vadd.f32 %v257_v48, %v256_v45  ;;  %455 = vlog2.f32 %v251_v47 }
  0x41   : > { %457 = vlog2.f32 %v258_v50 }
  0x49   : > { %v456_v58 = vpop.eup %455 }
  0x4a   : > { %v260_v59 = vmul.f32 0.6931472, %v456_v58 }
  0x4b   : > { %v458_v61 = vpop.eup %457 }
  0x4c   : > { %v262_v62 = vmul.f32 0.6931472, %v458_v61  ;;  %v263_v63 = vadd.f32 %v260_v59, %v227_v13 }
  0x4e   : > { %v264_v2 = vadd.f32 %v262_v62, %v234_v16  ;;  %v293_v3 = vsub.f32 %v263_v63, %v285_v60 }
  0x50   : > { %v294_v4 = vsub.f32 %v264_v2, %v292_v0 }
  0x52   : > { %v297_v6 = vcombine.low %v293_v3, %v294_v4 }
  0x54   : > { %v304_v7 = vrot.slane %v297_v6, %v303_v5 }
  0x56   : > { %v311_v8 = vrot.slane %v304_v7, %v303_v5 }
  0x58   : > { %v313_v9 = vsel %vm216_vm3, %v311_v8, 0.0 }
  0x59   : > { %318 = vst.msk [vmem:[%s212_s23] sm:$0x3] %vm316_vm4, %v313_v9 }
  0x5a PF: > { %s12_s11 = sadd.s32 1, %s481_s11   ;;  %s554_s9 = smov %s477_s10 }
  0x5b   : > { %p9_p5 = scmp.ge.s32.totalorder %s12_s11, 4   ;;  %s555_s10 = smov %s557_s12 }
  0x5d   :  { %11 = sbr.rel (!%p9_p5) target bundleno = 2 (0x2), region = 61 }

</bundles_post_ra>
